<compile_context>
chip_gen: v7x
topology: tpu7x:2x2x1
jax: 0.10.0
libtpu: 0.0.40
codegen_flags: <defaults>
</compile_context>

<pallas_src>
import functools

import jax
import jax.numpy as jnp
from jax import lax
from jax.experimental import pallas as pl
from jax.experimental.pallas import tpu as pltpu

EPS = 1e-5          # torch.nn.InstanceNorm2d default eps
NEG_SLOPE = 0.2     # LeakyReLU(negative_slope=0.2)


def _make_kernel(kh, kw, img_w, hw, pw, bt):
    """Fused conv + InstanceNorm + LeakyReLU kernel (one grid step = `bt` samples).

    Ref shapes per grid step:
      x_ref : (bt, Cin, (H+2ph)*W + 2pw)  bf16  H-padded image, flat, pw end-padding
      w_ref : (kh*kw, Cout, Cin)          bf16  conv weights, tap index t = di*kw+dj
      m_ref : (kw, 1, HW)                 bf16  0/1 column-validity masks (per dj)
      g_ref : (Cout, 1)                   f32   InstanceNorm gamma
      b_ref : (Cout, 1)                   f32   InstanceNorm beta
      o_ref : (bt, Cout, HW)              f32   lane-dense (HW on the lane axis)
    """
    inv_hw = 1.0 / float(hw)

    def kernel(x_ref, w_ref, m_ref, g_ref, b_ref, o_ref):
        w_all = w_ref[...]            # (kh*kw, Cout, Cin)  bf16
        masks = m_ref[...]            # (kw, 1, HW)         bf16
        gamma = g_ref[...]            # (Cout, 1)           f32
        beta = b_ref[...]             # (Cout, 1)           f32

        for s in range(bt):
            acc = None
            for di in range(kh):
                for dj in range(kw):
                    start = di * img_w + dj
                    xs = x_ref[s, :, pl.ds(start, hw)]        # (Cin, HW) bf16
                    if dj != pw:                              # zero row-wrap columns
                        xs = xs * masks[dj]
                    part = jnp.dot(w_all[di * kw + dj], xs,
                                   preferred_element_type=jnp.float32)
                    acc = part if acc is None else acc + part  # (Cout, HW) f32

            # InstanceNorm2d: per-(sample, channel) stats over the spatial (lane)
            # axis, biased variance, eps inside rsqrt, then affine.  One-pass sums.
            mean = jnp.sum(acc, axis=1, keepdims=True) * inv_hw
            var = jnp.sum(acc * acc, axis=1, keepdims=True) * inv_hw - mean * mean
            var = jnp.maximum(var, 0.0)
            y = (acc - mean) * lax.rsqrt(var + EPS)
            y = y * gamma + beta
            y = jnp.where(y >= 0, y, NEG_SLOPE * y)            # LeakyReLU(0.2)
            o_ref[s] = y.astype(o_ref.dtype)

    return kernel


@functools.partial(jax.jit,
                   static_argnames=("kernel_size", "stride", "padding", "block_batch"))
def transporter_block(x_nchw, conv_w, conv_b, gamma, beta,
                      kernel_size=(3, 3), stride=(1, 1), padding=(1, 1),
                      block_batch=1):
    """Forward pass of TransporterBlock.

    x_nchw : (N, Cin, H, W) f32     conv_w : (Cout, Cin, Kh, Kw)  (PyTorch layout)
    conv_b : (Cout,) (unused: bias cancels exactly under InstanceNorm)
    gamma, beta : (Cout,) InstanceNorm affine.  Returns (N, Cout, H, W) f32.
    """
    del conv_b  # per-channel constant before InstanceNorm cancels in mean subtraction

    kh, kw = kernel_size
    sh, sw = stride
    ph, pw = padding
    n, cin, h, w = x_nchw.shape
    cout = conv_w.shape[0]

    # TODO(synk): only stride=(1,1) 'same' convolutions are implemented in the fused
    # kernel (the demo / typical Transporter config); strided or valid convs would
    # need a separate (im2col-style) path.
    assert (sh, sw) == (1, 1), "fused kernel supports stride=(1,1) only"
    assert 2 * ph == kh - 1 and 2 * pw == kw - 1, "fused kernel needs 'same' padding"
    assert n % block_batch == 0

    hw = h * w
    ell = (h + 2 * ph) * w + 2 * pw

    # H-padded, flattened, pw-end-padded image rows: (N, Cin, L), bf16 (halves DMA).
    xp = jnp.pad(x_nchw, ((0, 0), (0, 0), (ph, ph), (0, 0)))
    xflat = jnp.pad(xp.reshape(n, cin, (h + 2 * ph) * w), ((0, 0), (0, 0), (pw, pw)))
    xflat = xflat.astype(jnp.bfloat16)

    # Conv weights as (kh*kw, Cout, Cin) bf16, tap index t = di*kw + dj.
    w_taps = jnp.transpose(conv_w, (2, 3, 0, 1)).reshape(kh * kw, cout, cin)
    w_taps = w_taps.astype(jnp.bfloat16)

    # Column-validity masks: for tap column dj, output column c is valid iff
    # 0 <= c + dj - pw < W (otherwise the flat shift wraps into an adjacent row).
    col = jnp.arange(hw, dtype=jnp.int32) % w
    mask = jnp.stack([(col >= (pw - dj)) & (col < (w + pw - dj)) for dj in range(kw)])
    mask = mask.astype(jnp.bfloat16).reshape(kw, 1, hw)

    g_col = gamma.reshape(cout, 1).astype(jnp.float32)
    b_col = beta.reshape(cout, 1).astype(jnp.float32)

    bt = block_batch
    kernel = _make_kernel(kh, kw, w, hw, pw, bt)

    # For very large H*W / Cin, shrink `block_batch`/tile HW and raise
    # vmem_limit_bytes (v7x has only 64 MiB VMEM); demo shapes are tiny.
    out = pl.pallas_call(
        kernel,
        out_shape=jax.ShapeDtypeStruct((n, cout, hw), jnp.float32),
        grid_spec=pltpu.PrefetchScalarGridSpec(
            num_scalar_prefetch=0,
            grid=(n // bt,),
            in_specs=[
                pl.BlockSpec((bt, cin, ell), lambda b: (b, 0, 0)),
                pl.BlockSpec((kh * kw, cout, cin), lambda b: (0, 0, 0)),
                pl.BlockSpec((kw, 1, hw), lambda b: (0, 0, 0)),
                pl.BlockSpec((cout, 1), lambda b: (0, 0)),
                pl.BlockSpec((cout, 1), lambda b: (0, 0)),
            ],
            out_specs=pl.BlockSpec((bt, cout, hw), lambda b: (b, 0, 0)),
        ),
        compiler_params=pltpu.CompilerParams(
            dimension_semantics=("parallel",)),
    )(xflat, w_taps, mask, g_col, b_col)

    # (N, Cout, HW) is already channel-major: a free reshape gives NCHW.
    return out.reshape(n, cout, h, w)


def _reference(x, conv_w, conv_b, gamma, beta, stride, padding,
               matmul_dtype=jnp.float32):
    """Plain-JAX reference (PyTorch semantics).  With matmul_dtype=bf16 it matches
    the kernel's MXU input quantization; bias is kept to verify it cancels."""
    y = lax.conv_general_dilated(
        x.astype(matmul_dtype), conv_w.astype(matmul_dtype),
        window_strides=stride,
        padding=[(padding[0], padding[0]), (padding[1], padding[1])],
        dimension_numbers=("NCHW", "OIHW", "NCHW"),
        preferred_element_type=jnp.float32)
    y = y + conv_b[None, :, None, None]
    mean = jnp.mean(y, axis=(2, 3), keepdims=True)
    var = jnp.mean((y - mean) ** 2, axis=(2, 3), keepdims=True)
    y = (y - mean) * lax.rsqrt(var + EPS)
    y = y * gamma[None, :, None, None] + beta[None, :, None, None]
    return jnp.where(y >= 0, y, NEG_SLOPE * y)


if __name__ == "__main__":
    # batch=2, in_channels=4, out_channels=8, spatial=16, kernel 3x3, stride 1, pad 1.
    N, CIN, COUT, H, W = 2, 4, 8, 16, 16
    KS, ST, PD = (3, 3), (1, 1), (1, 1)

    key = jax.random.PRNGKey(0)
    kx, kw_, kb = jax.random.split(key, 3)

    x = jax.random.normal(kx, (N, CIN, H, W), dtype=jnp.float32)
    fan_in = CIN * KS[0] * KS[1]
    bound = 1.0 / (fan_in ** 0.5)
    conv_w = jax.random.uniform(kw_, (COUT, CIN, KS[0], KS[1]),
                                minval=-bound, maxval=bound, dtype=jnp.float32)
    conv_b = jax.random.uniform(kb, (COUT,), minval=-bound, maxval=bound,
                                dtype=jnp.float32)
    gamma = jnp.ones((COUT,), jnp.float32)   # InstanceNorm2d affine defaults
    beta = jnp.zeros((COUT,), jnp.float32)

    out = transporter_block(x, conv_w, conv_b, gamma, beta,
                            kernel_size=KS, stride=ST, padding=PD)
    out = jax.block_until_ready(out)
    assert out.shape == (N, COUT, H, W)

    # Tight check vs a reference using the same bf16 MXU-input quantization.
    ref_bf16 = _reference(x, conv_w, conv_b, gamma, beta, ST, PD,
                          matmul_dtype=jnp.bfloat16)
    assert jnp.max(jnp.abs(out - ref_bf16)) < 2e-3, "mismatch vs bf16 reference"

    # Loose sanity check vs the full-f32 PyTorch-semantics reference
    # (difference comes only from bf16 quantization of the MXU operands).
    ref_f32 = _reference(x, conv_w, conv_b, gamma, beta, ST, PD)
    assert jnp.max(jnp.abs(out - ref_f32)) < 5e-2, "mismatch vs f32 reference"

    print("KERNEL_OK")
</pallas_src>

<mosaic_0001>
module attributes {stable_mosaic.version = 11 : i64} {
  func.func @kernel(%arg0: i32, %arg1: memref<1x4x290xbf16, #tpu.memory_space<vmem>>, %arg2: memref<9x8x4xbf16, #tpu.memory_space<vmem>>, %arg3: memref<3x1x256xbf16, #tpu.memory_space<vmem>>, %arg4: memref<8x1xf32, #tpu.memory_space<vmem>>, %arg5: memref<8x1xf32, #tpu.memory_space<vmem>>, %arg6: memref<1x8x256xf32, #tpu.memory_space<vmem>>) attributes {dimension_semantics = [#tpu.dimension_semantics<parallel>], iteration_bounds = array<i64: 2>, scalar_prefetch = 0 : i64, scratch_operands = 0 : i64, tpu.core_type = #tpu.core_type<tc>, window_params = [{transform_indices = @transform_0, window_bounds = array<i64: 1, 4, 290>}, {pipeline_mode = #tpu.pipeline_mode<synchronous>, transform_indices = @transform_1, window_bounds = array<i64: 9, 8, 4>}, {pipeline_mode = #tpu.pipeline_mode<synchronous>, transform_indices = @transform_2, window_bounds = array<i64: 3, 1, 256>}, {pipeline_mode = #tpu.pipeline_mode<synchronous>, transform_indices = @transform_3, window_bounds = array<i64: 8, 1>}, {pipeline_mode = #tpu.pipeline_mode<synchronous>, transform_indices = @transform_4, window_bounds = array<i64: 8, 1>}, {transform_indices = @transform_5, window_bounds = array<i64: 1, 8, 256>}]} {
    %c0 = arith.constant 0 : index
    %c0_0 = arith.constant 0 : index
    %c0_1 = arith.constant 0 : index
    %0 = vector.load %arg2[%c0, %c0_0, %c0_1] : memref<9x8x4xbf16, #tpu.memory_space<vmem>>, vector<9x8x4xbf16>
    %c0_2 = arith.constant 0 : index
    %c0_3 = arith.constant 0 : index
    %c0_4 = arith.constant 0 : index
    %1 = vector.load %arg3[%c0_2, %c0_3, %c0_4] : memref<3x1x256xbf16, #tpu.memory_space<vmem>>, vector<3x1x256xbf16>
    %c0_5 = arith.constant 0 : index
    %c0_6 = arith.constant 0 : index
    %2 = vector.load %arg4[%c0_5, %c0_6] : memref<8x1xf32, #tpu.memory_space<vmem>>, vector<8x1xf32>
    %c0_7 = arith.constant 0 : index
    %c0_8 = arith.constant 0 : index
    %3 = vector.load %arg5[%c0_7, %c0_8] : memref<8x1xf32, #tpu.memory_space<vmem>>, vector<8x1xf32>
    %c0_9 = arith.constant 0 : index
    %c0_10 = arith.constant 0 : index
    %c0_11 = arith.constant 0 : index
    %4 = vector.load %arg1[%c0_9, %c0_10, %c0_11] : memref<1x4x290xbf16, #tpu.memory_space<vmem>>, vector<1x4x256xbf16>
    %5 = vector.shape_cast %4 : vector<1x4x256xbf16> to vector<4x256xbf16>
    %6 = vector.extract_strided_slice %1 {offsets = [0, 0, 0], sizes = [1, 1, 256], strides = [1, 1, 1]} : vector<3x1x256xbf16> to vector<1x1x256xbf16>
    %7 = vector.shape_cast %6 : vector<1x1x256xbf16> to vector<1x256xbf16>
    %8 = vector.broadcast %7 : vector<1x256xbf16> to vector<4x256xbf16>
    %9 = arith.mulf %5, %8 : vector<4x256xbf16>
    %10 = vector.extract_strided_slice %0 {offsets = [0, 0, 0], sizes = [1, 8, 4], strides = [1, 1, 1]} : vector<9x8x4xbf16> to vector<1x8x4xbf16>
    %11 = vector.shape_cast %10 : vector<1x8x4xbf16> to vector<8x4xbf16>
    %cst = arith.constant dense<0.000000e+00> : vector<8x256xf32>
    %12 = tpu.matmul %11, %9, %cst {dimension_numbers = #tpu.dot_dimension_numbers<[1], [0], [0], [1], [0, 0, 1, 1], [], []>} : vector<8x4xbf16>, vector<4x256xbf16>, vector<8x256xf32> -> vector<8x256xf32>
    %c0_12 = arith.constant 0 : index
    %c0_13 = arith.constant 0 : index
    %c1 = arith.constant 1 : index
    %13 = vector.load %arg1[%c0_12, %c0_13, %c1] : memref<1x4x290xbf16, #tpu.memory_space<vmem>>, vector<1x4x256xbf16>
    %14 = vector.shape_cast %13 : vector<1x4x256xbf16> to vector<4x256xbf16>
    %15 = vector.extract_strided_slice %0 {offsets = [1, 0, 0], sizes = [1, 8, 4], strides = [1, 1, 1]} : vector<9x8x4xbf16> to vector<1x8x4xbf16>
    %16 = vector.shape_cast %15 : vector<1x8x4xbf16> to vector<8x4xbf16>
    %cst_14 = arith.constant dense<0.000000e+00> : vector<8x256xf32>
    %17 = tpu.matmul %16, %14, %cst_14 {dimension_numbers = #tpu.dot_dimension_numbers<[1], [0], [0], [1], [0, 0, 1, 1], [], []>} : vector<8x4xbf16>, vector<4x256xbf16>, vector<8x256xf32> -> vector<8x256xf32>
    %18 = arith.addf %12, %17 : vector<8x256xf32>
    %c0_15 = arith.constant 0 : index
    %c0_16 = arith.constant 0 : index
    %c2 = arith.constant 2 : index
    %19 = vector.load %arg1[%c0_15, %c0_16, %c2] : memref<1x4x290xbf16, #tpu.memory_space<vmem>>, vector<1x4x256xbf16>
    %20 = vector.shape_cast %19 : vector<1x4x256xbf16> to vector<4x256xbf16>
    %21 = vector.extract_strided_slice %1 {offsets = [2, 0, 0], sizes = [1, 1, 256], strides = [1, 1, 1]} : vector<3x1x256xbf16> to vector<1x1x256xbf16>
    %22 = vector.shape_cast %21 : vector<1x1x256xbf16> to vector<1x256xbf16>
    %23 = vector.broadcast %22 : vector<1x256xbf16> to vector<4x256xbf16>
    %24 = arith.mulf %20, %23 : vector<4x256xbf16>
    %25 = vector.extract_strided_slice %0 {offsets = [2, 0, 0], sizes = [1, 8, 4], strides = [1, 1, 1]} : vector<9x8x4xbf16> to vector<1x8x4xbf16>
    %26 = vector.shape_cast %25 : vector<1x8x4xbf16> to vector<8x4xbf16>
    %cst_17 = arith.constant dense<0.000000e+00> : vector<8x256xf32>
    %27 = tpu.matmul %26, %24, %cst_17 {dimension_numbers = #tpu.dot_dimension_numbers<[1], [0], [0], [1], [0, 0, 1, 1], [], []>} : vector<8x4xbf16>, vector<4x256xbf16>, vector<8x256xf32> -> vector<8x256xf32>
    %28 = arith.addf %18, %27 : vector<8x256xf32>
    %c0_18 = arith.constant 0 : index
    %c0_19 = arith.constant 0 : index
    %c16 = arith.constant 16 : index
    %29 = vector.load %arg1[%c0_18, %c0_19, %c16] : memref<1x4x290xbf16, #tpu.memory_space<vmem>>, vector<1x4x256xbf16>
    %30 = vector.shape_cast %29 : vector<1x4x256xbf16> to vector<4x256xbf16>
    %31 = vector.extract_strided_slice %1 {offsets = [0, 0, 0], sizes = [1, 1, 256], strides = [1, 1, 1]} : vector<3x1x256xbf16> to vector<1x1x256xbf16>
    %32 = vector.shape_cast %31 : vector<1x1x256xbf16> to vector<1x256xbf16>
    %33 = vector.broadcast %32 : vector<1x256xbf16> to vector<4x256xbf16>
    %34 = arith.mulf %30, %33 : vector<4x256xbf16>
    %35 = vector.extract_strided_slice %0 {offsets = [3, 0, 0], sizes = [1, 8, 4], strides = [1, 1, 1]} : vector<9x8x4xbf16> to vector<1x8x4xbf16>
    %36 = vector.shape_cast %35 : vector<1x8x4xbf16> to vector<8x4xbf16>
    %cst_20 = arith.constant dense<0.000000e+00> : vector<8x256xf32>
    %37 = tpu.matmul %36, %34, %cst_20 {dimension_numbers = #tpu.dot_dimension_numbers<[1], [0], [0], [1], [0, 0, 1, 1], [], []>} : vector<8x4xbf16>, vector<4x256xbf16>, vector<8x256xf32> -> vector<8x256xf32>
    %38 = arith.addf %28, %37 : vector<8x256xf32>
    %c0_21 = arith.constant 0 : index
    %c0_22 = arith.constant 0 : index
    %c17 = arith.constant 17 : index
    %39 = vector.load %arg1[%c0_21, %c0_22, %c17] : memref<1x4x290xbf16, #tpu.memory_space<vmem>>, vector<1x4x256xbf16>
    %40 = vector.shape_cast %39 : vector<1x4x256xbf16> to vector<4x256xbf16>
    %41 = vector.extract_strided_slice %0 {offsets = [4, 0, 0], sizes = [1, 8, 4], strides = [1, 1, 1]} : vector<9x8x4xbf16> to vector<1x8x4xbf16>
    %42 = vector.shape_cast %41 : vector<1x8x4xbf16> to vector<8x4xbf16>
    %cst_23 = arith.constant dense<0.000000e+00> : vector<8x256xf32>
    %43 = tpu.matmul %42, %40, %cst_23 {dimension_numbers = #tpu.dot_dimension_numbers<[1], [0], [0], [1], [0, 0, 1, 1], [], []>} : vector<8x4xbf16>, vector<4x256xbf16>, vector<8x256xf32> -> vector<8x256xf32>
    %44 = arith.addf %38, %43 : vector<8x256xf32>
    %c0_24 = arith.constant 0 : index
    %c0_25 = arith.constant 0 : index
    %c18 = arith.constant 18 : index
    %45 = vector.load %arg1[%c0_24, %c0_25, %c18] : memref<1x4x290xbf16, #tpu.memory_space<vmem>>, vector<1x4x256xbf16>
    %46 = vector.shape_cast %45 : vector<1x4x256xbf16> to vector<4x256xbf16>
    %47 = vector.extract_strided_slice %1 {offsets = [2, 0, 0], sizes = [1, 1, 256], strides = [1, 1, 1]} : vector<3x1x256xbf16> to vector<1x1x256xbf16>
    %48 = vector.shape_cast %47 : vector<1x1x256xbf16> to vector<1x256xbf16>
    %49 = vector.broadcast %48 : vector<1x256xbf16> to vector<4x256xbf16>
    %50 = arith.mulf %46, %49 : vector<4x256xbf16>
    %51 = vector.extract_strided_slice %0 {offsets = [5, 0, 0], sizes = [1, 8, 4], strides = [1, 1, 1]} : vector<9x8x4xbf16> to vector<1x8x4xbf16>
    %52 = vector.shape_cast %51 : vector<1x8x4xbf16> to vector<8x4xbf16>
    %cst_26 = arith.constant dense<0.000000e+00> : vector<8x256xf32>
    %53 = tpu.matmul %52, %50, %cst_26 {dimension_numbers = #tpu.dot_dimension_numbers<[1], [0], [0], [1], [0, 0, 1, 1], [], []>} : vector<8x4xbf16>, vector<4x256xbf16>, vector<8x256xf32> -> vector<8x256xf32>
    %54 = arith.addf %44, %53 : vector<8x256xf32>
    %c0_27 = arith.constant 0 : index
    %c0_28 = arith.constant 0 : index
    %c32 = arith.constant 32 : index
    %55 = vector.load %arg1[%c0_27, %c0_28, %c32] : memref<1x4x290xbf16, #tpu.memory_space<vmem>>, vector<1x4x256xbf16>
    %56 = vector.shape_cast %55 : vector<1x4x256xbf16> to vector<4x256xbf16>
    %57 = vector.extract_strided_slice %1 {offsets = [0, 0, 0], sizes = [1, 1, 256], strides = [1, 1, 1]} : vector<3x1x256xbf16> to vector<1x1x256xbf16>
    %58 = vector.shape_cast %57 : vector<1x1x256xbf16> to vector<1x256xbf16>
    %59 = vector.broadcast %58 : vector<1x256xbf16> to vector<4x256xbf16>
    %60 = arith.mulf %56, %59 : vector<4x256xbf16>
    %61 = vector.extract_strided_slice %0 {offsets = [6, 0, 0], sizes = [1, 8, 4], strides = [1, 1, 1]} : vector<9x8x4xbf16> to vector<1x8x4xbf16>
    %62 = vector.shape_cast %61 : vector<1x8x4xbf16> to vector<8x4xbf16>
    %cst_29 = arith.constant dense<0.000000e+00> : vector<8x256xf32>
    %63 = tpu.matmul %62, %60, %cst_29 {dimension_numbers = #tpu.dot_dimension_numbers<[1], [0], [0], [1], [0, 0, 1, 1], [], []>} : vector<8x4xbf16>, vector<4x256xbf16>, vector<8x256xf32> -> vector<8x256xf32>
    %64 = arith.addf %54, %63 : vector<8x256xf32>
    %c0_30 = arith.constant 0 : index
    %c0_31 = arith.constant 0 : index
    %c33 = arith.constant 33 : index
    %65 = vector.load %arg1[%c0_30, %c0_31, %c33] : memref<1x4x290xbf16, #tpu.memory_space<vmem>>, vector<1x4x256xbf16>
    %66 = vector.shape_cast %65 : vector<1x4x256xbf16> to vector<4x256xbf16>
    %67 = vector.extract_strided_slice %0 {offsets = [7, 0, 0], sizes = [1, 8, 4], strides = [1, 1, 1]} : vector<9x8x4xbf16> to vector<1x8x4xbf16>
    %68 = vector.shape_cast %67 : vector<1x8x4xbf16> to vector<8x4xbf16>
    %cst_32 = arith.constant dense<0.000000e+00> : vector<8x256xf32>
    %69 = tpu.matmul %68, %66, %cst_32 {dimension_numbers = #tpu.dot_dimension_numbers<[1], [0], [0], [1], [0, 0, 1, 1], [], []>} : vector<8x4xbf16>, vector<4x256xbf16>, vector<8x256xf32> -> vector<8x256xf32>
    %70 = arith.addf %64, %69 : vector<8x256xf32>
    %c0_33 = arith.constant 0 : index
    %c0_34 = arith.constant 0 : index
    %c34 = arith.constant 34 : index
    %71 = vector.load %arg1[%c0_33, %c0_34, %c34] : memref<1x4x290xbf16, #tpu.memory_space<vmem>>, vector<1x4x256xbf16>
    %72 = vector.shape_cast %71 : vector<1x4x256xbf16> to vector<4x256xbf16>
    %73 = vector.extract_strided_slice %1 {offsets = [2, 0, 0], sizes = [1, 1, 256], strides = [1, 1, 1]} : vector<3x1x256xbf16> to vector<1x1x256xbf16>
    %74 = vector.shape_cast %73 : vector<1x1x256xbf16> to vector<1x256xbf16>
    %75 = vector.broadcast %74 : vector<1x256xbf16> to vector<4x256xbf16>
    %76 = arith.mulf %72, %75 : vector<4x256xbf16>
    %77 = vector.extract_strided_slice %0 {offsets = [8, 0, 0], sizes = [1, 8, 4], strides = [1, 1, 1]} : vector<9x8x4xbf16> to vector<1x8x4xbf16>
    %78 = vector.shape_cast %77 : vector<1x8x4xbf16> to vector<8x4xbf16>
    %cst_35 = arith.constant dense<0.000000e+00> : vector<8x256xf32>
    %79 = tpu.matmul %78, %76, %cst_35 {dimension_numbers = #tpu.dot_dimension_numbers<[1], [0], [0], [1], [0, 0, 1, 1], [], []>} : vector<8x4xbf16>, vector<4x256xbf16>, vector<8x256xf32> -> vector<8x256xf32>
    %80 = arith.addf %70, %79 : vector<8x256xf32>
    %cst_36 = arith.constant dense<0.000000e+00> : vector<8xf32>
    %81 = vector.multi_reduction <add>, %80, %cst_36 [1] : vector<8x256xf32> to vector<8xf32>
    %82 = vector.shape_cast %81 : vector<8xf32> to vector<8x1xf32>
    %cst_37 = arith.constant 3.906250e-03 : f32
    %83 = vector.broadcast %cst_37 : f32 to vector<8x1xf32>
    %84 = arith.mulf %82, %83 : vector<8x1xf32>
    %85 = arith.mulf %80, %80 : vector<8x256xf32>
    %cst_38 = arith.constant dense<0.000000e+00> : vector<8xf32>
    %86 = vector.multi_reduction <add>, %85, %cst_38 [1] : vector<8x256xf32> to vector<8xf32>
    %87 = vector.shape_cast %86 : vector<8xf32> to vector<8x1xf32>
    %cst_39 = arith.constant 3.906250e-03 : f32
    %88 = vector.broadcast %cst_39 : f32 to vector<8x1xf32>
    %89 = arith.mulf %87, %88 : vector<8x1xf32>
    %90 = arith.mulf %84, %84 : vector<8x1xf32>
    %91 = arith.subf %89, %90 : vector<8x1xf32>
    %cst_40 = arith.constant 0.000000e+00 : f32
    %92 = vector.broadcast %cst_40 : f32 to vector<8x1xf32>
    %93 = arith.maximumf %91, %92 : vector<8x1xf32>
    %94 = vector.broadcast %84 : vector<8x1xf32> to vector<8x256xf32>
    %95 = arith.subf %80, %94 : vector<8x256xf32>
    %cst_41 = arith.constant 9.99999974E-6 : f32
    %96 = vector.broadcast %cst_41 : f32 to vector<8x1xf32>
    %97 = arith.addf %93, %96 : vector<8x1xf32>
    %98 = math.rsqrt %97 : vector<8x1xf32>
    %99 = vector.broadcast %98 : vector<8x1xf32> to vector<8x256xf32>
    %100 = arith.mulf %95, %99 : vector<8x256xf32>
    %101 = vector.broadcast %2 : vector<8x1xf32> to vector<8x256xf32>
    %102 = arith.mulf %100, %101 : vector<8x256xf32>
    %103 = vector.broadcast %3 : vector<8x1xf32> to vector<8x256xf32>
    %104 = arith.addf %102, %103 : vector<8x256xf32>
    %cst_42 = arith.constant 0.000000e+00 : f32
    %105 = vector.broadcast %cst_42 : f32 to vector<8x256xf32>
    %106 = arith.cmpf oge, %104, %105 : vector<8x256xf32>
    %cst_43 = arith.constant 2.000000e-01 : f32
    %107 = vector.broadcast %cst_43 : f32 to vector<8x256xf32>
    %108 = arith.mulf %107, %104 : vector<8x256xf32>
    %109 = arith.select %106, %104, %108 : vector<8x256xi1>, vector<8x256xf32>
    %c0_44 = arith.constant 0 : index
    %c0_45 = arith.constant 0 : index
    %c0_46 = arith.constant 0 : index
    %110 = vector.load %arg6[%c0_44, %c0_45, %c0_46] : memref<1x8x256xf32, #tpu.memory_space<vmem>>, vector<1x8x256xf32>
    %111 = vector.shape_cast %110 : vector<1x8x256xf32> to vector<8x256xf32>
    %112 = vector.shape_cast %109 : vector<8x256xf32> to vector<1x8x256xf32>
    tpu.vector_store %arg6[%c0_44, %c0_45, %c0_46], %112 {strides = array<i32>} : memref<1x8x256xf32, #tpu.memory_space<vmem>>, vector<1x8x256xf32>,
    return
  }
  func.func @transform_0(%arg0: i32) -> (i32, i32, i32) {
    %c0_i32 = arith.constant 0 : i32
    %c0_i32_0 = arith.constant 0 : i32
    %c0_i32_1 = arith.constant 0 : i32
    return %arg0, %c0_i32, %c0_i32_0 : i32, i32, i32
  }
  func.func @transform_1(%arg0: i32) -> (i32, i32, i32) {
    %c0_i32 = arith.constant 0 : i32
    %c0_i32_0 = arith.constant 0 : i32
    %c0_i32_1 = arith.constant 0 : i32
    %c0_i32_2 = arith.constant 0 : i32
    return %c0_i32, %c0_i32_0, %c0_i32_1 : i32, i32, i32
  }
  func.func @transform_2(%arg0: i32) -> (i32, i32, i32) {
    %c0_i32 = arith.constant 0 : i32
    %c0_i32_0 = arith.constant 0 : i32
    %c0_i32_1 = arith.constant 0 : i32
    %c0_i32_2 = arith.constant 0 : i32
    return %c0_i32, %c0_i32_0, %c0_i32_1 : i32, i32, i32
  }
  func.func @transform_3(%arg0: i32) -> (i32, i32) {
    %c0_i32 = arith.constant 0 : i32
    %c0_i32_0 = arith.constant 0 : i32
    %c0_i32_1 = arith.constant 0 : i32
    return %c0_i32, %c0_i32_0 : i32, i32
  }
  func.func @transform_4(%arg0: i32) -> (i32, i32) {
    %c0_i32 = arith.constant 0 : i32
    %c0_i32_0 = arith.constant 0 : i32
    %c0_i32_1 = arith.constant 0 : i32
    return %c0_i32, %c0_i32_0 : i32, i32
  }
  func.func @transform_5(%arg0: i32) -> (i32, i32, i32) {
    %c0_i32 = arith.constant 0 : i32
    %c0_i32_0 = arith.constant 0 : i32
    %c0_i32_1 = arith.constant 0 : i32
    return %arg0, %c0_i32, %c0_i32_0 : i32, i32, i32
  }
}

</mosaic_0001>

<bundles_post_ra>
// kernel: transporter_block.1
= control target key start
LH: loop header
LB: loop body
LE: loop exit
PB: predicated region body
PF: predicated region fallthrough
CT: control target
= control target key end

     0   :  { %s1305_s18 = smov 0   ;;  %s1455_s0 = inlined_call_operand.vmem [shape: bf16[2,4,290], index: 0, kind: input, shape index: {}]   ;;  %s1456_s1 = inlined_call_operand.vmem [shape: bf16[9,8,4], index: 1, kind: input, shape index: {}]   ;;  %s1457_s2 = inlined_call_operand.vmem [shape: bf16[3,1,256], index: 2, kind: input, shape index: {}]   ;;  %s1458_s3 = inlined_call_operand.vmem [shape: f32[8,1], index: 3, kind: input, shape index: {}]   ;;  %s1459_s4 = inlined_call_operand.vmem [shape: f32[8,1], index: 4, kind: input, shape index: {}]   ;;  %s1460_s5 = inlined_call_operand.vmem [shape: f32[2,8,256], index: 5, kind: output, shape index: {}]  }
   0x1 LB: > { %s1158_s19 = sadd.s32 4294967295, %s1257_s18   ;;  %p1162_p0 = scmp.ge.s32.totalorder %s1257_s18, 1  ;;  %s1257_s18 = sphi %s1305_s18, %s15_s18  }
   0x2   : > { %p187_p1 = scmp.lt.s32.totalorder %s1257_s18, 3 }
   0x4   : > { %p188_p2 = pnand %p1162_p0, %p187_p1 }
   0x5   : > { %v1171_v0 = vld.sshfl [vmem:[%s1457_s2 + $0x4] sm:$0x11 pattern:$0x75316420] (!%p188_p2)  ;;  %v252_v1 = vlaneseq (!%p188_p2)  ;;  %v1259_v2 = vmov (!%p188_p2), 1966171168  }
   0x6   : > { %191 = sbr.rel (%p188_p2) target bundleno = 694 (0x2b6), region = 40  ;;  %v250_v3 = vunpack.c.l.s4 (!%p188_p2), %v1259_v2  ;;  %v1260_v5 = vmov (!%p188_p2), 1983009808   ;;  %p215_p3 = scmp.lt.s32.totalorder (!%p188_p2), %s1158_s19, 1  ;;  %v436_v9 = vcombine.high (!%p188_p2), %v1171_v0, %v1171_v0  ;;  %v1268_v43 = vmov (!%p188_p2), 0  }
   0x7   : > { %v253_v4 = vshrl.u32 (!%p188_p2), %v252_v1, 7  ;;  %v281_v6 = vunpack.c.l.s4 (!%p188_p2), %v1260_v5  ;;  %v1166_v7 = vld.sshfl [vmem:[%s1457_s2] sm:$0x11 pattern:$0x75316420] (!%p188_p2)  ;;  %s1261_s28 = smov (!%p188_p2), 18   ;;  %714 = vmatprep.mubr.bf16.mxu0 (!%p188_p2), %v1268_v43  ;;  %359 = vmatprep.mubr.bf16.mxu1 (!%p188_p2), %v1268_v43 }
   0x8   : > { %v251_v8 = vunpack.c.0.s8 (!%p188_p2), %v250_v3  ;;  %v248_v10 = vcombine.high (!%p188_p2), %v1166_v7, %v1166_v7  ;;  %s1262_s29 = smov (!%p188_p2), 2   ;;  %s1263_s30 = smov (!%p188_p2), 32   ;;  %1244 = vset.pattern.permute.xlu0 (!%p188_p2), %v1268_v43  ;;  %1245 = vset.pattern.permute.xlu1 (!%p188_p2), %v1268_v43  ;;  %vm729_vm0 = vcmask (!%p188_p2), 146432   ;;  %vm815_vm1 = vcmask (!%p188_p2), 261120  }
   0x9   : > { %v268_v12 = vsub.s32 (!%p188_p2), 0, %v253_v4  ;;  %v282_v13 = vunpack.c.0.s8 (!%p188_p2), %v281_v6  ;;  %s1264_s6 = smov (!%p188_p2), 16   ;;  %s1265_s7 = smov (!%p188_p2), 34   ;;  %vm478_vm2 = vcmask (!%p188_p2), 15360   ;;  %vm670_vm3 = vcmask (!%p188_p2), 908288  }
   0xa   : > { %v254_v11 = vsub.s32 (!%p188_p2), %v251_v8, %v253_v4  ;;  %s1266_s8 = smov (!%p188_p2), 111   ;;  %s1267_s9 = smov (!%p188_p2), 127   ;;  %vm320_vm4 = vcmask (!%p188_p2), 1041408   ;;  %vm313_vm5 = vcmask (!%p188_p2), 1039360   ;;  %vm316_vm6 = vcmask (!%p188_p2), 31744  }
   0xb   : > { %v1322_v22 = vsub.s32 (!%p188_p2), %v282_v13, %v253_v4  ;;  %s1269_s10 = smov (!%p188_p2), 110   ;;  %s1270_s11 = smov (!%p188_p2), 96   ;;  %v230_v13 = vld [vmem:[%s1456_s1 + $0x10] sm:$0xf] (!%p188_p2)  ;;  %vm564_vm7 = vcmask (!%p188_p2), 130048   ;;  %vm980_vm8 = vcmask (!%p188_p2), 277504  }
   0xc   : > { %v443_v14 = vrot.slane (!%p188_p2), %v1171_v0, %v254_v11  ;;  %v450_v15 = vrot.slane (!%p188_p2), %v436_v9, %v254_v11  ;;  %v255_v16 = vrot.slane (!%p188_p2), %v1166_v7, %v254_v11  ;;  %v262_v17 = vrot.slane (!%p188_p2), %v248_v10, %v254_v11  ;;  %s1271_s14 = smov (!%p188_p2), 126   ;;  %s1272_s15 = smov (!%p188_p2), 95  }
   0xd   : > { %s1462_s19 = smov (!%p215_p3, %s1158_s19), 1  ;;  %s1273_s20 = smov 112   ;;  %vm756_vm9 = vcmask 900096   ;;  %vm842_vm10 = vcmask 785408   ;;  %vm921_vm11 = vcmask 777216   ;;  %vm505_vm12 = vcmask 1031168  }
   0xe   : > { %v452_v18 = vpack.i.b16 %v443_v14, %v443_v14  ;;  %v459_v19 = vpack.i.b16 %v450_v15, %v450_v15  ;;  %v264_v20 = vpack.i.b16 %v255_v16, %v255_v16  ;;  %v271_v21 = vpack.i.b16 %v262_v17, %v262_v17  ;;  %s1219_s24 = smul.u32 6, %s1462_s19  ;;  %s1274_s21 = smov 94  }
   0xf   : > { %vm591_vm13 = vcmask 916480   ;;  %vm1007_vm14 = vcmask 769024  }
  0x10   : > { %v457_v23 = vrot.slane %v452_v18, %v268_v12  ;;  %v464_v24 = vrot.slane %v459_v19, %v268_v12  ;;  %v269_v25 = vrot.slane %v264_v20, %v268_v12  ;;  %v276_v26 = vrot.slane %v271_v21, %v268_v12  ;;  %s1327_s27 = scalar_lea.vmem %s1455_s0, %s1219_s24 }
  0x11   : > { %v1330_v29 = vld [vmem:[%s1327_s27] sm:$0xf] }
  0x12   : > { %v467_v27 = vcombine.low %v457_v23, %v464_v24  ;;  %v279_v28 = vcombine.low %v269_v25, %v276_v26  ;;  %v646_v33 = vld [vmem:[%s1327_s27] sm:$0x3f] }
  0x13   : > { %v655_v34 = vrot.slane %v646_v33, %v1322_v22  ;;  %v648_v35 = vcombine.high %v646_v33, %v646_v33  ;;  %v289_v36 = vld [vmem:[%s1327_s27] sm:$0x3f] }
  0x14   : > { %v474_v30 = vrot.slane %v467_v27, %v1322_v22  ;;  %v1334_v31 = vrot.slane %v279_v28, %v1322_v22  ;;  %v298_v39 = vrot.slane %v289_v36, %v1322_v22  ;;  %v291_v41 = vcombine.high %v289_v36, %v289_v36  ;;  %v725_v46 = vld [vmem:[%s1327_s27] sm:$0x3f] }
  0x15   : > { %v663_v37 = vcombine.high %v655_v34, %v655_v34  ;;  %v662_v38 = vrot.slane %v648_v35, %v1322_v22  ;;  %v811_v52 = vld [vmem:[%s1327_s27] sm:$0x3f] }
  0x16   : > { %726 = vrot.lane.b32.xlu0 %v474_v30, %s1261_s28  ;;  %v288_v32 = vmul.bf16 %v1334_v31, %v1330_v29  ;;  %475 = vrot.lane.b32.xlu1 %v474_v30, %s1262_s29  ;;  %v306_v40 = vcombine.high %v298_v39, %v298_v39  ;;  %v305_v42 = vrot.slane %v291_v41, %v1322_v22  ;;  %v427_v62 = vld [vmem:[%s1327_s27] sm:$0x3f] }
  0x17   : > { %v897_v5 = vld [vmem:[%s1327_s27] sm:$0x3f] }
  0x18   : > { %v906_v12 = vrot.slane %v897_v5, %v1322_v22  ;;  %v375_v17 = vrot.slane %v288_v32, %v1322_v22  ;;  %v899_v20 = vcombine.high %v897_v5, %v897_v5  ;;  %v560_v28 = vld [vmem:[%s1327_s27] sm:$0x3f] }
  0x19   : > { %v976_v32 = vld [vmem:[%s1327_s27] sm:$0x3f] }
  0x1a   : > { %812 = vrot.lane.b32.xlu0 %v1334_v31, %s1263_s30  ;;  %561 = vrot.lane.b32.xlu1 %v1334_v31, %s1264_s6  ;;  %v914_v21 = vcombine.high %v906_v12, %v906_v12  ;;  %v376_v27 = vcombine.high %v375_v17, %v375_v17  ;;  %v913_v31 = vrot.slane %v899_v20, %v1322_v22 }
  0x1e   : > { %977 = vrot.lane.b32.xlu0 %v474_v30, %s1265_s7  ;;  %664 = vrot.lane.b32.xlu1 %v655_v34, %s1266_s8  ;;  %v227_v34 = vld [vmem:[%s1456_s1 + $0x4] sm:$0xf] }
  0x22   : > { %666 = vrot.lane.b32.xlu0 %v663_v37, %s1266_s8  ;;  %668 = vrot.lane.b32.xlu1 %v662_v38, %s1266_s8  ;;  %v381_v37 = vsel %vm320_vm4, %v375_v17, 0 }
  0x26   : > { %307 = vrot.lane.b32.xlu0 %v298_v39, %s1267_s9  ;;  %309 = vrot.lane.b32.xlu1 %v306_v40, %s1267_s9 }
  0x2a   : > { %311 = vrot.lane.b32.xlu0 %v305_v42, %s1267_s9 }
  0x88   : > { %v727_v44 = vpop.permute.xlu0 %726  ;;  %v476_v45 = vpop.permute.xlu1 %475 }
  0x89   : > { %v728_v47 = vrot.slane %v727_v44, 6  ;;  %v477_v54 = vrot.slane %v476_v45, 6 }
  0x8b   : > { %v730_v48 = vsel %vm729_vm0, %v728_v47, %v727_v44  ;;  %v479_v63 = vsel %vm478_vm2, %v477_v54, %v476_v45 }
  0x8c   : > { %v732_v49 = vmul.bf16 %v730_v48, %v725_v46  ;;  %v813_v50 = vpop.permute.xlu0 %812  ;;  %v1351_v51 = vpop.permute.xlu1 %561  ;;  %v481_v3 = vmul.bf16 %v479_v63, %v427_v62  ;;  %v226_v46 = vld [vmem:[%s1456_s1] sm:$0xf] }
  0x8d   : > { %v814_v53 = vrot.slane %v813_v50, 6  ;;  %v563_v18 = vrot.slane %v1351_v51, 6 }
  0x8e   : > { %v734_v55 = vcombine.high %v732_v49, %v732_v49  ;;  %v741_v56 = vrot.slane %v732_v49, %v1322_v22  ;;  %v490_v14 = vrot.slane %v481_v3, %v1322_v22  ;;  %v483_v24 = vcombine.high %v481_v3, %v481_v3 }
  0x8f   : > { %v816_v57 = vsel %vm815_vm1, %v814_v53, %v813_v50  ;;  %v565_v29 = vsel %vm564_vm7, %v563_v18, %v1351_v51  ;;  %v233_v18 = vld [vmem:[%s1456_s1 + $0x1c] sm:$0xf] }
  0x90   : > { %v818_v58 = vmul.bf16 %v816_v57, %v811_v52  ;;  %750 = vrot.lane.b32.xlu1 %v741_v56, %s1269_s10  ;;  %v749_v59 = vcombine.high %v741_v56, %v741_v56  ;;  %v978_v60 = vpop.permute.xlu0 %977  ;;  %v665_v61 = vpop.permute.xlu1 %664  ;;  %v748_v1 = vrot.slane %v734_v55, %v1322_v22  ;;  %v567_v35 = vmul.bf16 %v565_v29, %v560_v28  ;;  %v231_v57 = vld [vmem:[%s1456_s1 + $0x14] sm:$0xf] }
  0x91   : > { %v979_v23 = vrot.slane %v978_v60, 6  ;;  %v497_v36 = vrot.slane %v483_v24, %v1322_v22  ;;  %v498_v40 = vcombine.high %v490_v14, %v490_v14 }
  0x92   : > { %v820_v0 = vcombine.high %v818_v58, %v818_v58  ;;  %752 = vrot.lane.b32.xlu0 %v749_v59, %s1269_s10  ;;  %v827_v2 = vrot.slane %v818_v58, %v1322_v22  ;;  %v569_v39 = vcombine.high %v567_v35, %v567_v35  ;;  %v576_v41 = vrot.slane %v567_v35, %v1322_v22 }
  0x93   : > { %v981_v33 = vsel %vm980_vm8, %v979_v23, %v978_v60 }
  0x94   : > { %754 = vrot.lane.b32.xlu1 %v748_v1, %s1269_s10  ;;  %v835_v4 = vcombine.high %v827_v2, %v827_v2  ;;  %v667_v6 = vpop.permute.xlu0 %666  ;;  %v669_v7 = vpop.permute.xlu1 %668  ;;  %v834_v10 = vrot.slane %v820_v0, %v1322_v22  ;;  %v983_v38 = vmul.bf16 %v981_v33, %v976_v32  ;;  %v583_v44 = vrot.slane %v569_v39, %v1322_v22 }
  0x95   : > { %v672_v8 = vsel %vm670_vm3, %v667_v6, %v669_v7  ;;  %v671_v9 = vsel %vm670_vm3, %v665_v61, %v667_v6  ;;  %v584_v45 = vcombine.high %v576_v41, %v576_v41 }
  0x96   : > { %836 = vrot.lane.b32.xlu0 %v827_v2, %s1270_s11  ;;  %1176 = vmatprep.subr.msk.bf16.mxu0 %vm320_vm4, %v672_v8  ;;  %v677_v11 = vsel %vm320_vm4, %v671_v9, 0  ;;  %v992_v42 = vrot.slane %v983_v38, %v1322_v22  ;;  %v985_v47 = vcombine.high %v983_v38, %v983_v38 }
  0x97   : > { %683 = vmatpush1.bf16.msra.mxu0 %v677_v11 }
  0x98   : > { %838 = vrot.lane.b32.xlu1 %v835_v4, %s1270_s11  ;;  %v308_v15 = vpop.permute.xlu0 %307  ;;  %v310_v16 = vpop.permute.xlu1 %309  ;;  %v1000_v48 = vcombine.high %v992_v42, %v992_v42  ;;  %v999_v49 = vrot.slane %v985_v47, %v1322_v22  ;;  %v232_v4 = vld [vmem:[%s1456_s1 + $0x18] sm:$0xf] }
  0x99   : > { %v314_v19 = vsel %vm313_vm5, %v308_v15, %v310_v16 }
  0x9a   : > { %840 = vrot.lane.b32.xlu0 %v834_v10, %s1270_s11  ;;  %1177 = vmatmul.mubr.msk.bf16.vlgmr.msra.gmra.mrb[0].mxu0 %vm316_vm6, %v230_v13  ;;  %v322_v26 = vsel %vm320_vm4, %v314_v19, 0 }
  0x9b   : > { %800 = vmatprep.mubr.bf16.mxu0 %v1268_v43 }
  0x9c   : > { %499 = vrot.lane.b32.xlu1 %v490_v14, %s1271_s14  ;;  %v312_v25 = vpop.permute.xlu0 %311 }
  0x9d   : > { %v315_v30 = vsel %vm313_vm5, %v310_v16, %v312_v25 }
  0x9e   : > { %915 = vrot.lane.b32.xlu0 %v906_v12, %s1272_s15  ;;  %1167 = vmatprep.subr.msk.bf16.mxu1 %vm320_vm4, %v315_v30  ;;  %v228_v12 = vld [vmem:[%s1456_s1 + $0x8] sm:$0xf] }
  0x9f   : > { %328 = vmatpush1.bf16.msra.mxu1 %v322_v26  ;;  %v229_v26 = vld [vmem:[%s1456_s1 + $0xc] sm:$0xf] }
  0xa0   : > { %917 = vrot.lane.b32.xlu1 %v914_v21, %s1272_s15  ;;  %1169 = vmatprep.subr.msk.bf16.mxu1 %vm320_vm4, %v376_v27  ;;  %v234_v27 = vld [vmem:[%s1456_s1 + $0x20] sm:$0xf] }
  0xa2   : > { %919 = vrot.lane.b32.xlu0 %v913_v31, %s1272_s15  ;;  %1168 = vmatmul.mubr.msk.bf16.vlgmr.msra.gmra.mrb[0].mxu1 %vm316_vm6, %v227_v34  ;;  %s1188_s15 = sshll.u32 %s1462_s19, 4 }
  0xa3   : > { %387 = vmatpush1.bf16.msra.mxu1 %v381_v37  ;;  %418 = vmatprep.mubr.bf16.mxu1 %v1268_v43 }
  0xa4   : > { %503 = vrot.lane.b32.xlu1 %v497_v36, %s1271_s14 }
  0xa6   : > { %501 = vrot.lane.b32.xlu0 %v498_v40, %s1271_s14 }
  0xa8   : > { %585 = vrot.lane.b32.xlu1 %v576_v41, %s1273_s20  ;;  %v238_v41 = vld [vmem:[%s1459_s4] sm:$0xff] }
  0xaa   : > { %1001 = vrot.lane.b32.xlu0 %v992_v42, %s1274_s21  ;;  %v237_v42 = vld [vmem:[%s1458_s3] sm:$0xff] }
  0xac   : > { %589 = vrot.lane.b32.xlu1 %v583_v44, %s1273_s20 }
  0xae   : > { %587 = vrot.lane.b32.xlu0 %v584_v45, %s1273_s20  ;;  %1170 = vmatmul.mubr.msk.bf16.vlgmr.msra.gmra.mrb[0].mxu1 %vm316_vm6, %v226_v46  ;;  %s224_s20 = scalar_lea.vmem %s1460_s5, %s1188_s15 }
  0xaf   : > { %549 = vmatprep.mubr.bf16.mxu1 %v1268_v43 }
  0xb0   : > { %1003 = vrot.lane.b32.xlu1 %v1000_v48, %s1274_s21 }
  0xb2   : > { %1005 = vrot.lane.b32.xlu0 %v999_v49, %s1274_s21 }
 0x102   : > { %v751_v50 = vpop.permute.xlu1 %750 }
 0x104   : > { %v753_v51 = vpop.permute.xlu0 %752 }
 0x105   : > { %v757_v52 = vsel %vm756_vm9, %v751_v50, %v753_v51 }
 0x106   : > { %v755_v53 = vpop.permute.xlu1 %754  ;;  %v763_v55 = vsel %vm320_vm4, %v757_v52, 0 }
 0x107   : > { %v758_v54 = vsel %vm756_vm9, %v753_v51, %v755_v53 }
 0x108   : > { %1178 = vmatprep.subr.msk.bf16.mxu0 %vm320_vm4, %v758_v54  ;;  %v837_v56 = vpop.permute.xlu0 %836 }
 0x109   : > { %769 = vmatpush1.bf16.msra.mxu0 %v763_v55 }
 0x10a   : > { %v839_v58 = vpop.permute.xlu1 %838 }
 0x10b   : > { %v843_v22 = vsel %vm842_vm10, %v837_v56, %v839_v58 }
 0x10c   : > { %v849_v59 = vsel %vm320_vm4, %v843_v22, 0  ;;  %1179 = vmatmul.mubr.msk.bf16.vlgmr.msra.gmra.mrb[0].mxu0 %vm316_vm6, %v231_v57  ;;  %v841_v60 = vpop.permute.xlu0 %840 }
 0x10d   : > { %v844_v61 = vsel %vm842_vm10, %v839_v58, %v841_v60  ;;  %886 = vmatprep.mubr.bf16.mxu0 %v1268_v43 }
 0x10e   : > { %v500_v62 = vpop.permute.xlu1 %499  ;;  %1180 = vmatprep.subr.msk.bf16.mxu0 %vm320_vm4, %v844_v61 }
 0x10f   : > { %855 = vmatpush1.bf16.msra.mxu0 %v849_v59 }
 0x110   : > { %v916_v63 = vpop.permute.xlu0 %915 }
 0x112   : > { %v918_v0 = vpop.permute.xlu1 %917 }
 0x113   : > { %v922_v1 = vsel %vm921_vm11, %v916_v63, %v918_v0 }
 0x114   : > { %v920_v2 = vpop.permute.xlu0 %919  ;;  %v928_v5 = vsel %vm320_vm4, %v922_v1, 0 }
 0x115   : > { %v923_v3 = vsel %vm921_vm11, %v918_v0, %v920_v2 }
 0x116   : > { %v504_v6 = vpop.permute.xlu1 %503  ;;  %1182 = vmatprep.subr.msk.bf16.mxu0 %vm320_vm4, %v923_v3 }
 0x118   : > { %1181 = vmatmul.mubr.msk.bf16.vlgmr.msra.gmra.mrb[0].mxu0 %vm316_vm6, %v232_v4  ;;  %v502_v7 = vpop.permute.xlu0 %501 }
 0x119   : > { %v506_v8 = vsel %vm505_vm12, %v500_v62, %v502_v7  ;;  %v507_v9 = vsel %vm505_vm12, %v502_v7, %v504_v6  ;;  %934 = vmatpush1.bf16.msra.mxu0 %v928_v5  ;;  %965 = vmatprep.mubr.bf16.mxu0 %v1268_v43 }
 0x11a   : > { %v512_v10 = vsel %vm320_vm4, %v506_v8, 0  ;;  %v586_v11 = vpop.permute.xlu1 %585  ;;  %1172 = vmatprep.subr.msk.bf16.mxu1 %vm320_vm4, %v507_v9 }
 0x11b   : > { %518 = vmatpush1.bf16.msra.mxu1 %v512_v10 }
 0x11c   : > { %v1002_v13 = vpop.permute.xlu0 %1001 }
 0x11e   : > { %v590_v14 = vpop.permute.xlu1 %589  ;;  %1173 = vmatmul.mubr.msk.bf16.vlgmr.msra.gmra.mrb[0].mxu1 %vm316_vm6, %v228_v12 }
 0x11f   : > { %635 = vmatprep.mubr.bf16.mxu1 %v1268_v43 }
 0x120   : > { %v588_v15 = vpop.permute.xlu0 %587 }
 0x121   : > { %v592_v16 = vsel %vm591_vm13, %v586_v11, %v588_v15  ;;  %v593_v17 = vsel %vm591_vm13, %v588_v15, %v590_v14 }
 0x122   : > { %v598_v19 = vsel %vm320_vm4, %v592_v16, 0  ;;  %v1004_v20 = vpop.permute.xlu1 %1003  ;;  %1174 = vmatprep.subr.msk.bf16.mxu1 %vm320_vm4, %v593_v17 }
 0x123   : > { %v1008_v21 = vsel %vm1007_vm14, %v1002_v13, %v1004_v20  ;;  %604 = vmatpush1.bf16.msra.mxu1 %v598_v19 }
 0x124   : > { %1183 = vmatmul.mubr.msk.bf16.vlgmr.msra.gmra.mrb[0].mxu0 %vm316_vm6, %v233_v18  ;;  %v1006_v23 = vpop.permute.xlu0 %1005  ;;  %v1014_v25 = vsel %vm320_vm4, %v1008_v21, 0 }
 0x125   : > { %v1009_v24 = vsel %vm1007_vm14, %v1004_v20, %v1006_v23  ;;  %1051 = vmatprep.mubr.bf16.mxu0 %v1268_v43 }
 0x126   : > { %1184 = vmatprep.subr.msk.bf16.mxu0 %vm320_vm4, %v1009_v24 }
 0x127   : > { %1020 = vmatpush1.bf16.msra.mxu0 %v1014_v25 }
 0x12a   : > { %1175 = vmatmul.mubr.msk.bf16.vlgmr.msra.gmra.mrb[0].mxu1 %vm316_vm6, %v229_v26 }
 0x130   : > { %1185 = vmatmul.mubr.msk.bf16.vlgmr.msra.gmra.mrb[0].mxu0 %vm316_vm6, %v234_v27 }
 0x1fd   : > { %v637_v28 = vpop.f32.mrb[0].mxu1 }
 0x1fe   : > { %v639_v29 = vpop.f32.mrb[1].mxu1 }
 0x1ff   : > { %v641_v43 = vpop.f32.mrb[2].mxu1 }
 0x200   : > { %v642_v30 = vpop.f32.mrb[3].mxu1 }
 0x203   : > { %v1053_v31 = vpop.f32.mrb[0].mxu0 }
 0x204   : > { %v1189_v32 = vadd.f32 %v1053_v31, %v637_v28  ;;  %v1055_v33 = vpop.f32.mrb[1].mxu0 }
 0x205   : > { %v1190_v34 = vadd.f32 %v1055_v33, %v639_v29  ;;  %v1057_v35 = vpop.f32.mrb[2].mxu0 }
 0x206   : > { %v1058_v36 = vpop.f32.mrb[3].mxu0  ;;  %v1066_v37 = vmul.f32 %v1189_v32, %v1189_v32 }
 0x207   : > { %v1062_v38 = vadd.f32 %v1190_v34, %v1189_v32  ;;  %v1067_v39 = vmul.f32 %v1190_v34, %v1190_v34 }
 0x209   : > { %1063 = vadd.xlane.f32.xlu1 %v1062_v38  ;;  %v1068_v40 = vadd.f32 %v1067_v39, %v1066_v37 }
 0x20b   : > { %1069 = vadd.xlane.f32.xlu0 %v1068_v40 }
 0x21a   : > { %1090 = vperm.xlu1 %1245, %v238_v41  }
 0x221   : > { %1083 = vperm.xlu0 %1244, %v237_v42  }
 0x296   : > { %v1064_v44 = vpop.xlane.xlu1 %1063 }
 0x297   : > { %v1065_v45 = vmul.f32 0.00390625, %v1064_v44 }
 0x298   : > { %v1070_v46 = vpop.xlane.xlu0 %1069 }
 0x299   : > { %v1071_v47 = vmul.f32 0.00390625, %v1070_v46  ;;  %v1072_v48 = vmul.f32 %v1065_v45, %v1065_v45  ;;  %v1075_v52 = vsub.f32 %v1189_v32, %v1065_v45  ;;  %v1076_v53 = vsub.f32 %v1190_v34, %v1065_v45 }
 0x29a   : > { %v1091_v58 = vpop.permute.xlu1 %1090 }
 0x29b   : > { %v1073_v49 = vsub.f32 %v1071_v47, %v1072_v48 }
 0x29d   : > { %v1074_v50 = vmax.f32 %v1073_v49, 0.0 }
 0x29f   : > { %v1077_v51 = vadd.f32 1e-05, %v1074_v50 }
 0x2a0   : > { %v1084_v55 = vpop.permute.xlu0 %1083 }
 0x2a1   : > { %1249 = vrsqrt.f32 %v1077_v51 }
 0x2ab   : > { %v1250_v54 = vpop.eup %1249 }
 0x2ac   : > { %v1079_v56 = vmul.f32 %v1250_v54, %v1075_v52  ;;  %v1080_v57 = vmul.f32 %v1250_v54, %v1076_v53 }
 0x2ae   : > { %v1086_v22 = vmul.f32 %v1084_v55, %v1079_v56  ;;  %v1087_v59 = vmul.f32 %v1084_v55, %v1080_v57 }
 0x2b0   : > { %v1093_v60 = vadd.f32 %v1091_v58, %v1086_v22  ;;  %v1094_v61 = vadd.f32 %v1091_v58, %v1087_v59 }
 0x2b2   : > { %vm1095_vm15 = vcmp.ge.f32.partialorder %v1093_v60, 0.0  ;;  %vm1096_vm0 = vcmp.ge.f32.partialorder %v1094_v61, 0.0  ;;  %v1097_v62 = vmul.f32 0.2, %v1093_v60  ;;  %v1098_v63 = vmul.f32 0.2, %v1094_v61 }
 0x2b4   : > { %v1099_v0 = vsel %vm1095_vm15, %v1093_v60, %v1097_v62  ;;  %v1100_v1 = vsel %vm1096_vm0, %v1094_v61, %v1098_v63 }
 0x2b5   : > { %1101 = vst [vmem:[%s224_s20] sm:$0xff] %v1099_v0  ;;  %1102 = vst [vmem:[%s224_s20 + $0x8] sm:$0xff] %v1100_v1 }
 0x2b6 PF: > { %s15_s18 = sadd.s32 1, %s1257_s18  }
 0x2b7   : > { %p12_p4 = scmp.ge.s32.totalorder %s15_s18, 4  }
 0x2b9   :  { %14 = sbr.rel (!%p12_p4) target bundleno = 1 (0x1), region = 70 }

</bundles_post_ra>
